<compile_context>
chip_gen: v5e
topology: v5e:2x2
jax: 0.10.0
libtpu: 0.0.40
codegen_flags: <defaults>
</compile_context>

<pallas_src>
import functools

import jax
import jax.numpy as jnp
from jax.experimental import pallas as pl
from jax.experimental.pallas import tpu as pltpu

N_FEATURES = 11
N_CLASSES = 3
HIDDEN = (128, 64, 32, 16)
BN_EPS = 1e-5
OUT_ROWS = 8          # final layer padded 3 -> 8 rows (sublane-aligned)
LANE = 128            # batch lives on the lane axis
DEFAULT_TB = 1024     # default batch tile (measured ~86% of HBM roofline)


# ----------------------------- kernel ------------------------------------- #
def mlp_kernel(x_ref,                                   # (11, tb)  bf16  x^T
               w1_ref, w2_ref, w3_ref, w4_ref, w5_ref,  # W^T (BN folded) bf16
               b_ref,                                    # (128, 8) f32: col l = bias of layer l
               o_ref):                                   # (8, tb)  f32
    def block(h, w_ref, col, out_dim):
        # Linear (+ folded BatchNorm affine) -> ReLU, computed as W^T @ h so
        # the batch stays on the lane axis.  Dropout is identity in eval mode.
        y = jnp.dot(w_ref[...], h, preferred_element_type=jnp.float32)
        y = y + b_ref[:out_dim, col:col + 1]             # lane-broadcast bias
        return jnp.maximum(y, 0.0).astype(jnp.bfloat16)

    h = x_ref[...]                                       # (11, tb) bf16
    h = block(h, w1_ref, 0, 128)
    h = block(h, w2_ref, 1, 64)
    h = block(h, w3_ref, 2, 32)
    h = block(h, w4_ref, 3, 16)
    out = jnp.dot(w5_ref[...], h, preferred_element_type=jnp.float32)
    out = out + b_ref[:OUT_ROWS, 4:5]                    # rows 3..7 are zero pad
    # TODO(synk): training-mode dropout / batch-stat BN not implemented
    # (would need pltpu.prng_random_bits and a whole-batch reduction).
    o_ref[...] = out.astype(o_ref.dtype)


# ------------------------- parameters / folding ---------------------------- #
def init_params(key):
    """Deterministic synthetic raw params: per layer {w, b[, gamma, beta,
    mean, var]} matching PyTorch Linear + BatchNorm1d layout (w is (in,out))."""
    dims = (N_FEATURES,) + HIDDEN + (N_CLASSES,)
    layers = []
    keys = jax.random.split(key, len(dims) - 1)
    for li in range(len(dims) - 1):
        fan_in, fan_out = dims[li], dims[li + 1]
        kw, kb, kg, kbt, km, kv = jax.random.split(keys[li], 6)
        bound = 1.0 / jnp.sqrt(jnp.float32(fan_in))
        layer = {
            "w": jax.random.uniform(kw, (fan_in, fan_out), jnp.float32, -bound, bound),
            "b": jax.random.uniform(kb, (fan_out,), jnp.float32, -bound, bound),
        }
        if li < len(dims) - 2:  # BN only after the 4 hidden Linear layers
            layer["gamma"] = 1.0 + 0.1 * jax.random.normal(kg, (fan_out,), jnp.float32)
            layer["beta"] = 0.1 * jax.random.normal(kbt, (fan_out,), jnp.float32)
            layer["mean"] = 0.1 * jax.random.normal(km, (fan_out,), jnp.float32)
            layer["var"] = jnp.abs(1.0 + 0.1 * jax.random.normal(kv, (fan_out,), jnp.float32))
        layers.append(layer)
    return layers


def fold_params(raw):
    """Fold BN affine + bias into (W', b') in f32, store W'^T (out, in) in
    bf16, pad the final layer to OUT_ROWS rows, and pack all biases into one
    (128, 8) f32 column pack (column l = bias of layer l)."""
    ws = []
    bias_pack = jnp.zeros((128, 8), jnp.float32)
    for li, layer in enumerate(raw):
        w, b = layer["w"], layer["b"]
        if "gamma" in layer:
            scale = layer["gamma"] / jnp.sqrt(layer["var"] + BN_EPS)
            shift = layer["beta"] - layer["mean"] * scale
            w = w * scale[None, :]
            b = b * scale + shift
        wt = w.T                                        # (out, in)
        if li == len(raw) - 1:                          # pad 3 -> 8 output rows
            wt = jnp.pad(wt, ((0, OUT_ROWS - wt.shape[0]), (0, 0)))
        ws.append(wt.astype(jnp.bfloat16))
        bias_pack = bias_pack.at[: b.shape[0], li].set(b)
    return tuple(ws), bias_pack


def reference_forward(x, raw):
    """Pure-JAX f32 reference of the PyTorch forward (eval mode)."""
    h = x
    for layer in raw:
        h = h @ layer["w"] + layer["b"]
        if "gamma" in layer:
            h = (h - layer["mean"]) / jnp.sqrt(layer["var"] + BN_EPS)
            h = h * layer["gamma"] + layer["beta"]
            h = jnp.maximum(h, 0.0)
    return h


# ------------------------------ wrapper ------------------------------------ #
def _pick_batch_tile(B, tb):
    """Batch is the lane axis, so tiles are multiples of 128, capped at the
    (padded) batch.  No tile halving: bigger tiles = fewer grid steps on a
    mem-bound kernel.  (v7x's two TensorCores still split the 'parallel' grid
    axis whenever the batch spans multiple tiles.)"""
    tb = max(LANE, (tb // LANE) * LANE)
    min_pad = pl.cdiv(B, LANE) * LANE
    return min(tb, min_pad)


def _run(xt, ws, bias_pack, *, tb):
    """Build and invoke the fused pallas_call.  xt is (11, B_pad) bf16."""
    B_pad = xt.shape[1]
    grid = (B_pad // tb,)

    x_spec = pl.BlockSpec((N_FEATURES, tb), lambda i: (0, i))
    w_specs = [pl.BlockSpec(w.shape, lambda i: (0, 0)) for w in ws]
    b_spec = pl.BlockSpec(bias_pack.shape, lambda i: (0, 0))
    out_spec = pl.BlockSpec((OUT_ROWS, tb), lambda i: (0, i))

    dims_in = (N_FEATURES,) + HIDDEN
    dims_out = HIDDEN + (OUT_ROWS,)
    flops = 2 * B_pad * sum(a * b for a, b in zip(dims_in, dims_out))
    bytes_accessed = (xt.size * 2                      # bf16 input
                      + OUT_ROWS * B_pad * 4           # f32 output (tiny slab)
                      + sum(w.size * 2 for w in ws)    # bf16 weights
                      + bias_pack.size * 4)            # f32 bias pack

    return pl.pallas_call(
        mlp_kernel,
        out_shape=jax.ShapeDtypeStruct((OUT_ROWS, B_pad), jnp.float32),
        grid_spec=pltpu.PrefetchScalarGridSpec(
            num_scalar_prefetch=0,
            grid=grid,
            in_specs=[x_spec] + w_specs + [b_spec],
            out_specs=out_spec,
        ),
        compiler_params=pltpu.CompilerParams(
            dimension_semantics=("parallel",)),
        cost_estimate=pl.CostEstimate(flops=flops, transcendentals=0,
                                      bytes_accessed=bytes_accessed),
    )(xt, *ws, bias_pack)


def make_forward(raw_params, *, tb=DEFAULT_TB):
    """Fold params once on the host and return a jitted forward(x) -> (B, 3).
    All per-call work (pad, transpose, bf16 cast, kernel, slice) is jitted."""
    ws, bias_pack = fold_params(raw_params)

    @jax.jit
    def forward(x):
        B = x.shape[0]
        tb_eff = _pick_batch_tile(B, tb)
        B_pad = pl.cdiv(B, tb_eff) * tb_eff
        xt = jnp.pad(x.astype(jnp.bfloat16), ((0, B_pad - B), (0, 0))).T
        out = _run(xt, ws, bias_pack, tb=tb_eff)        # (8, B_pad) f32
        return out[:N_CLASSES, :B].T                    # (B, 3)

    return forward


# -------------------------------- main ------------------------------------- #
if __name__ == "__main__":
    key = jax.random.PRNGKey(0)
    kx, kp = jax.random.split(key)

    B = 16
    x = jax.random.normal(kx, (B, N_FEATURES), dtype=jnp.float32)
    raw = init_params(kp)

    forward = make_forward(raw)
    out = jax.block_until_ready(forward(x))

    assert out.shape == (B, N_CLASSES)
    assert jnp.all(jnp.isfinite(out))

    ref = reference_forward(x, raw)
    assert jnp.allclose(out, ref, rtol=5e-2, atol=5e-2), (
        f"max abs err {jnp.max(jnp.abs(out - ref))}")

    print("KERNEL_OK")
</pallas_src>

<mosaic_0001>
module attributes {stable_mosaic.version = 11 : i64} {
  func.func @mlp_kernel(%arg0: i32, %arg1: memref<11x128xbf16, #tpu.memory_space<vmem>>, %arg2: memref<128x11xbf16, #tpu.memory_space<vmem>>, %arg3: memref<64x128xbf16, #tpu.memory_space<vmem>>, %arg4: memref<32x64xbf16, #tpu.memory_space<vmem>>, %arg5: memref<16x32xbf16, #tpu.memory_space<vmem>>, %arg6: memref<8x16xbf16, #tpu.memory_space<vmem>>, %arg7: memref<128x8xf32, #tpu.memory_space<vmem>>, %arg8: memref<8x128xf32, #tpu.memory_space<vmem>>) attributes {dimension_semantics = [#tpu.dimension_semantics<parallel>], iteration_bounds = array<i64: 1>, scalar_prefetch = 0 : i64, scratch_operands = 0 : i64, tpu.core_type = #tpu.core_type<tc>, window_params = [{transform_indices = @transform_0, window_bounds = array<i64: 11, 128>}, {pipeline_mode = #tpu.pipeline_mode<synchronous>, transform_indices = @transform_1, window_bounds = array<i64: 128, 11>}, {pipeline_mode = #tpu.pipeline_mode<synchronous>, transform_indices = @transform_2, window_bounds = array<i64: 64, 128>}, {pipeline_mode = #tpu.pipeline_mode<synchronous>, transform_indices = @transform_3, window_bounds = array<i64: 32, 64>}, {pipeline_mode = #tpu.pipeline_mode<synchronous>, transform_indices = @transform_4, window_bounds = array<i64: 16, 32>}, {pipeline_mode = #tpu.pipeline_mode<synchronous>, transform_indices = @transform_5, window_bounds = array<i64: 8, 16>}, {pipeline_mode = #tpu.pipeline_mode<synchronous>, transform_indices = @transform_6, window_bounds = array<i64: 128, 8>}, {transform_indices = @transform_7, window_bounds = array<i64: 8, 128>}]} {
    %c0 = arith.constant 0 : index
    %c0_0 = arith.constant 0 : index
    %0 = vector.load %arg1[%c0, %c0_0] : memref<11x128xbf16, #tpu.memory_space<vmem>>, vector<11x128xbf16>
    %c0_1 = arith.constant 0 : index
    %c0_2 = arith.constant 0 : index
    %1 = vector.load %arg2[%c0_1, %c0_2] : memref<128x11xbf16, #tpu.memory_space<vmem>>, vector<128x11xbf16>
    %cst = arith.constant dense<0.000000e+00> : vector<128x128xf32>
    %2 = tpu.matmul %1, %0, %cst {dimension_numbers = #tpu.dot_dimension_numbers<[1], [0], [0], [1], [0, 0, 1, 1], [], []>} : vector<128x11xbf16>, vector<11x128xbf16>, vector<128x128xf32> -> vector<128x128xf32>
    %c0_3 = arith.constant 0 : index
    %c0_4 = arith.constant 0 : index
    %3 = vector.load %arg7[%c0_3, %c0_4] : memref<128x8xf32, #tpu.memory_space<vmem>>, vector<128x1xf32>
    %4 = vector.broadcast %3 : vector<128x1xf32> to vector<128x128xf32>
    %5 = arith.addf %2, %4 : vector<128x128xf32>
    %cst_5 = arith.constant 0.000000e+00 : f32
    %6 = vector.broadcast %cst_5 : f32 to vector<128x128xf32>
    %7 = arith.maximumf %5, %6 : vector<128x128xf32>
    %8 = arith.truncf %7 : vector<128x128xf32> to vector<128x128xbf16>
    %c0_6 = arith.constant 0 : index
    %c0_7 = arith.constant 0 : index
    %9 = vector.load %arg3[%c0_6, %c0_7] : memref<64x128xbf16, #tpu.memory_space<vmem>>, vector<64x128xbf16>
    %cst_8 = arith.constant dense<0.000000e+00> : vector<64x128xf32>
    %10 = tpu.matmul %9, %8, %cst_8 {dimension_numbers = #tpu.dot_dimension_numbers<[1], [0], [0], [1], [0, 0, 1, 1], [], []>} : vector<64x128xbf16>, vector<128x128xbf16>, vector<64x128xf32> -> vector<64x128xf32>
    %c0_9 = arith.constant 0 : index
    %c1 = arith.constant 1 : index
    %11 = vector.load %arg7[%c0_9, %c1] : memref<128x8xf32, #tpu.memory_space<vmem>>, vector<64x1xf32>
    %12 = vector.broadcast %11 : vector<64x1xf32> to vector<64x128xf32>
    %13 = arith.addf %10, %12 : vector<64x128xf32>
    %cst_10 = arith.constant 0.000000e+00 : f32
    %14 = vector.broadcast %cst_10 : f32 to vector<64x128xf32>
    %15 = arith.maximumf %13, %14 : vector<64x128xf32>
    %16 = arith.truncf %15 : vector<64x128xf32> to vector<64x128xbf16>
    %c0_11 = arith.constant 0 : index
    %c0_12 = arith.constant 0 : index
    %17 = vector.load %arg4[%c0_11, %c0_12] : memref<32x64xbf16, #tpu.memory_space<vmem>>, vector<32x64xbf16>
    %cst_13 = arith.constant dense<0.000000e+00> : vector<32x128xf32>
    %18 = tpu.matmul %17, %16, %cst_13 {dimension_numbers = #tpu.dot_dimension_numbers<[1], [0], [0], [1], [0, 0, 1, 1], [], []>} : vector<32x64xbf16>, vector<64x128xbf16>, vector<32x128xf32> -> vector<32x128xf32>
    %c0_14 = arith.constant 0 : index
    %c2 = arith.constant 2 : index
    %19 = vector.load %arg7[%c0_14, %c2] : memref<128x8xf32, #tpu.memory_space<vmem>>, vector<32x1xf32>
    %20 = vector.broadcast %19 : vector<32x1xf32> to vector<32x128xf32>
    %21 = arith.addf %18, %20 : vector<32x128xf32>
    %cst_15 = arith.constant 0.000000e+00 : f32
    %22 = vector.broadcast %cst_15 : f32 to vector<32x128xf32>
    %23 = arith.maximumf %21, %22 : vector<32x128xf32>
    %24 = arith.truncf %23 : vector<32x128xf32> to vector<32x128xbf16>
    %c0_16 = arith.constant 0 : index
    %c0_17 = arith.constant 0 : index
    %25 = vector.load %arg5[%c0_16, %c0_17] : memref<16x32xbf16, #tpu.memory_space<vmem>>, vector<16x32xbf16>
    %cst_18 = arith.constant dense<0.000000e+00> : vector<16x128xf32>
    %26 = tpu.matmul %25, %24, %cst_18 {dimension_numbers = #tpu.dot_dimension_numbers<[1], [0], [0], [1], [0, 0, 1, 1], [], []>} : vector<16x32xbf16>, vector<32x128xbf16>, vector<16x128xf32> -> vector<16x128xf32>
    %c0_19 = arith.constant 0 : index
    %c3 = arith.constant 3 : index
    %27 = vector.load %arg7[%c0_19, %c3] : memref<128x8xf32, #tpu.memory_space<vmem>>, vector<16x1xf32>
    %28 = vector.broadcast %27 : vector<16x1xf32> to vector<16x128xf32>
    %29 = arith.addf %26, %28 : vector<16x128xf32>
    %cst_20 = arith.constant 0.000000e+00 : f32
    %30 = vector.broadcast %cst_20 : f32 to vector<16x128xf32>
    %31 = arith.maximumf %29, %30 : vector<16x128xf32>
    %32 = arith.truncf %31 : vector<16x128xf32> to vector<16x128xbf16>
    %c0_21 = arith.constant 0 : index
    %c0_22 = arith.constant 0 : index
    %33 = vector.load %arg6[%c0_21, %c0_22] : memref<8x16xbf16, #tpu.memory_space<vmem>>, vector<8x16xbf16>
    %cst_23 = arith.constant dense<0.000000e+00> : vector<8x128xf32>
    %34 = tpu.matmul %33, %32, %cst_23 {dimension_numbers = #tpu.dot_dimension_numbers<[1], [0], [0], [1], [0, 0, 1, 1], [], []>} : vector<8x16xbf16>, vector<16x128xbf16>, vector<8x128xf32> -> vector<8x128xf32>
    %c0_24 = arith.constant 0 : index
    %c4 = arith.constant 4 : index
    %35 = vector.load %arg7[%c0_24, %c4] : memref<128x8xf32, #tpu.memory_space<vmem>>, vector<8x1xf32>
    %36 = vector.broadcast %35 : vector<8x1xf32> to vector<8x128xf32>
    %37 = arith.addf %34, %36 : vector<8x128xf32>
    %c0_25 = arith.constant 0 : index
    %c0_26 = arith.constant 0 : index
    %38 = vector.load %arg8[%c0_25, %c0_26] : memref<8x128xf32, #tpu.memory_space<vmem>>, vector<8x128xf32>
    tpu.vector_store %arg8[%c0_25, %c0_26], %37 {strides = array<i32>} : memref<8x128xf32, #tpu.memory_space<vmem>>, vector<8x128xf32>,
    return
  }
  func.func @transform_0(%arg0: i32) -> (i32, i32) {
    %c0_i32 = arith.constant 0 : i32
    %c0_i32_0 = arith.constant 0 : i32
    return %c0_i32, %arg0 : i32, i32
  }
  func.func @transform_1(%arg0: i32) -> (i32, i32) {
    %c0_i32 = arith.constant 0 : i32
    %c0_i32_0 = arith.constant 0 : i32
    %c0_i32_1 = arith.constant 0 : i32
    return %c0_i32, %c0_i32_0 : i32, i32
  }
  func.func @transform_2(%arg0: i32) -> (i32, i32) {
    %c0_i32 = arith.constant 0 : i32
    %c0_i32_0 = arith.constant 0 : i32
    %c0_i32_1 = arith.constant 0 : i32
    return %c0_i32, %c0_i32_0 : i32, i32
  }
  func.func @transform_3(%arg0: i32) -> (i32, i32) {
    %c0_i32 = arith.constant 0 : i32
    %c0_i32_0 = arith.constant 0 : i32
    %c0_i32_1 = arith.constant 0 : i32
    return %c0_i32, %c0_i32_0 : i32, i32
  }
  func.func @transform_4(%arg0: i32) -> (i32, i32) {
    %c0_i32 = arith.constant 0 : i32
    %c0_i32_0 = arith.constant 0 : i32
    %c0_i32_1 = arith.constant 0 : i32
    return %c0_i32, %c0_i32_0 : i32, i32
  }
  func.func @transform_5(%arg0: i32) -> (i32, i32) {
    %c0_i32 = arith.constant 0 : i32
    %c0_i32_0 = arith.constant 0 : i32
    %c0_i32_1 = arith.constant 0 : i32
    return %c0_i32, %c0_i32_0 : i32, i32
  }
  func.func @transform_6(%arg0: i32) -> (i32, i32) {
    %c0_i32 = arith.constant 0 : i32
    %c0_i32_0 = arith.constant 0 : i32
    %c0_i32_1 = arith.constant 0 : i32
    return %c0_i32, %c0_i32_0 : i32, i32
  }
  func.func @transform_7(%arg0: i32) -> (i32, i32) {
    %c0_i32 = arith.constant 0 : i32
    %c0_i32_0 = arith.constant 0 : i32
    return %c0_i32, %arg0 : i32, i32
  }
}

</mosaic_0001>

<bundles_post_ra>
// kernel: forward.1
= control target key start
LH: loop header
LB: loop body
LE: loop exit
PB: predicated region body
PF: predicated region fallthrough
CT: control target
= control target key end

     0   :  { %12 = vsyncpa [#allocation3], 0  ;;  %s940_s0 = inlined_call_operand.vmem [shape: bf16[11,128], index: 0, kind: input, shape index: {}]   ;;  %s941_s1 = inlined_call_operand.hbm [shape: bf16[128,11], index: 1, kind: input, shape index: {}]   ;;  %s942_s2 = inlined_call_operand.vmem [shape: bf16[64,128], index: 2, kind: input, shape index: {}]   ;;  %s943_s3 = inlined_call_operand.hbm [shape: bf16[32,64], index: 3, kind: input, shape index: {}]   ;;  %s944_s4 = inlined_call_operand.vmem [shape: bf16[16,32], index: 4, kind: input, shape index: {}]   ;;  %s945_s5 = inlined_call_operand.vmem [shape: bf16[8,16], index: 5, kind: input, shape index: {}]   ;;  %s946_s6 = inlined_call_operand.hbm [shape: f32[128,8], index: 6, kind: input, shape index: {}]   ;;  %s947_s7 = inlined_call_operand.vmem [shape: f32[8,128], index: 7, kind: output, shape index: {}]  }
   0x1   :  { %13 = vsyncpa [#allocation5], 0  ;;  %s35_s26 = sshll.u32 %s943_s3, 4  ;;  %s795_s27 = smov [#allocation4]   ;;  %s36_s26 = int_to_ptr.hbm [resolvable:$true] %s35_s26 }
   0x2   :  { %s37_s28 = sshll.u32 %s795_s27, 4  ;;  %s20_s8 = sshll.u32 %s941_s1, 4  ;;  %s38_s28 = int_to_ptr.vmem [resolvable:$true] %s37_s28  ;;  %s21_s8 = int_to_ptr.hbm [resolvable:$true] %s20_s8 }
   0x3   :  { %s796_s9 = smov 64   ;;  %s797_s10 = smov 4  }
   0x4   :  { %43 = dma.hbm_to_vmem [thread:$0]  %s36_s26, 256, %s38_s28, [#allocation5], %s796_s9, %s796_s9, %s797_s10  }
   0x5   :  { %s798_s11 = smov [#allocation2]   ;;  %s52_s15 = sshll.u32 %s946_s6, 4  ;;  %s53_s15 = int_to_ptr.hbm [resolvable:$true] %s52_s15 }
   0x6   :  { %s22_s12 = sshll.u32 %s798_s11, 4  ;;  %s799_s3 = smov [#allocation6]   ;;  %s23_s12 = int_to_ptr.vmem [resolvable:$true] %s22_s12 }
   0x7   :  { %28 = dma.hbm_to_vmem [thread:$0]  %s21_s8, 1024, %s23_s12, [#allocation3], %s796_s9, %s796_s9, %s797_s10  }
   0x8   :  { %s54_s16 = sshll.u32 %s799_s3, 4  ;;  %s800_s17 = smov 128   ;;  %s55_s16 = int_to_ptr.vmem [resolvable:$true] %s54_s16 }
   0x9   :  { %s801_s18 = smov 8  }
   0xa   :  { %60 = dma.hbm_to_vmem [thread:$0]  %s53_s15, 2048, %s55_s16, [#allocation5], %s800_s17, %s800_s17, %s801_s18  }
   0xb   :  { %791 = dma.done.wait [#allocation3], 1024  }
   0xc   :  { %792 = vsyncadd [#allocation3], 4294966272 }
   0xd   :  { %793 = dma.done.wait [#allocation5], 2304  }
   0xe   :  { %794 = vsyncadd [#allocation5], 4294964992  ;;  %v802_v0 = vmov 0   ;;  %vm258_vm0 = vcmask 1044480   ;;  %vm259_vm1 = vcmask 1045504   ;;  %v803_v1 = vmov 65535  }
   0xf   :  { %706 = vset.pattern.permute.xlu0 %v802_v0  ;;  %708 = vset.pattern.permute.xlu2 %v802_v0  ;;  %v260_v2 = vsel %vm258_vm0, 4294967295, %v803_v1  ;;  %v106_v3 = vld [vmem:[#allocation6 + $0x70] sm:$0xff]  ;;  %v104_v8 = vld [vmem:[#allocation6 + $0x60] sm:$0xff]  ;;  %v682_v12 = vld [vmem:[#allocation2 + $0x28] sm:$0xff]  ;;  %vm233_vm2 = vcmask 89088   ;;  %vm497_vm3 = vcmask 523264  }
  0x10   :  { %707 = vset.pattern.permute.xlu1 %v802_v0  ;;  %v634_v4 = vld [vmem:[%s940_s0] sm:$0xf]  ;;  %v676_v5 = vld [vmem:[%s940_s0] sm:$0x30]  ;;  %v261_v6 = vsel %vm259_vm1, %v260_v2, 0  ;;  %180 = vperm.xlu0 %706, %v106_v3   ;;  %v107_v13 = vld [vmem:[#allocation6 + $0x78] sm:$0xff] }
  0x11   :  { %v635_v7 = vor.u32 %v676_v5, %v634_v4  ;;  %v102_v9 = vld [vmem:[#allocation6 + $0x50] sm:$0xff]  ;;  %170 = vperm.xlu1 %707, %v104_v8   ;;  %v105_v14 = vld [vmem:[#allocation6 + $0x68] sm:$0xff]  ;;  %v103_v15 = vld [vmem:[#allocation6 + $0x58] sm:$0xff]  ;;  %vm548_vm4 = vcmask 261120   ;;  %vm576_vm5 = vcmask 130048  }
  0x12   :  { %160 = vperm.xlu2 %708, %v102_v9   ;;  %v677_v11 = vld [vmem:[#allocation2] sm:$0xff]  ;;  %v100_v16 = vld [vmem:[#allocation6 + $0x40] sm:$0xff]  ;;  %v101_v17 = vld [vmem:[#allocation6 + $0x48] sm:$0xff] }
  0x13   :  { %v263_v10 = vand.u32 %v635_v7, %v261_v6  ;;  %v865_v18 = vld [vmem:[#allocation6 + $0x30] sm:$0xff]  ;;  %v678_v19 = vld [vmem:[#allocation2 + $0x8] sm:$0xff]  ;;  %v683_v20 = vld [vmem:[#allocation2 + $0x30] sm:$0xff] }
  0x14   :  { %v868_v21 = vld [vmem:[#allocation6 + $0x38] sm:$0xff]  ;;  %v872_v22 = vld [vmem:[#allocation6 + $0x28] sm:$0xff]  ;;  %v874_v23 = vld [vmem:[#allocation6 + $0x20] sm:$0xff] }
  0x15   :  { %272 = vmatpush.bf16.msra.mxu0 %v263_v10  ;;  %692 = vmatpush.bf16.msra.mxu3 %v263_v10  ;;  %v879_v24 = vld [vmem:[#allocation6 + $0x10] sm:$0xff]  ;;  %v881_v25 = vld [vmem:[#allocation6 + $0x18] sm:$0xff]  ;;  %v883_v26 = vld [vmem:[#allocation6] sm:$0xff] }
  0x16   :  { %v679_v27 = vld [vmem:[#allocation2 + $0x10] sm:$0xff]  ;;  %v684_v28 = vld [vmem:[#allocation2 + $0x38] sm:$0xff]  ;;  %v681_v31 = vld [vmem:[#allocation2 + $0x20] sm:$0xff] }
  0x17   :  { %v888_v29 = vld [vmem:[#allocation6 + $0x8] sm:$0xff] }
  0x18   :  { %636 = vmatmul.msk.bf16.vlgmr.msra.gmra.mxu0 %vm233_vm2, %v677_v11  ;;  %641 = vmatmul.msk.bf16.vlgmr.msra.gmra.mxu3 %vm233_vm2, %v682_v12  ;;  %v680_v30 = vld [vmem:[#allocation2 + $0x18] sm:$0xff] }
  0x19   :  { %185 = vperm.xlu0 %706, %v107_v13   ;;  %175 = vperm.xlu1 %707, %v105_v14  }
  0x1a   :  { %165 = vperm.xlu2 %708, %v103_v15  }
  0x21   :  { %150 = vperm.xlu0 %706, %v100_v16   ;;  %155 = vperm.xlu1 %707, %v101_v17   ;;  %v804_v17 = vmov 1  }
  0x22   :  { %140 = vperm.xlu2 %708, %v865_v18  }
  0x28   :  { %637 = vmatmul.msk.bf16.gmra.mxu0 %vm233_vm2, %v678_v19  ;;  %642 = vmatmul.msk.bf16.gmra.mxu3 %vm233_vm2, %v683_v20 }
  0x29   :  { %145 = vperm.xlu0 %706, %v868_v21   ;;  %130 = vperm.xlu1 %707, %v874_v23  }
  0x2a   :  { %135 = vperm.xlu2 %708, %v872_v22  }
  0x31   :  { %120 = vperm.xlu0 %706, %v879_v24   ;;  %125 = vperm.xlu1 %707, %v881_v25  }
  0x32   :  { %110 = vperm.xlu2 %708, %v883_v26  }
  0x38   :  { %638 = vmatmul.msk.bf16.gmra.mxu0 %vm233_vm2, %v679_v27  ;;  %643 = vmatmul.msk.bf16.gmra.mxu3 %vm233_vm2, %v684_v28 }
  0x39   :  { %115 = vperm.xlu0 %706, %v888_v29   ;;  %709 = vset.pattern.permute.xlu1 %v804_v17 }
  0x3a   :  { %710 = vset.pattern.permute.xlu2 %v804_v17  ;;  %386 = vperm.xlu1 %709, %v865_v18  }
  0x3b   :  { %391 = vperm.xlu2 %710, %v868_v21  }
  0x41   :  { %711 = vset.pattern.permute.xlu0 %v804_v17 }
  0x42   :  { %376 = vperm.xlu0 %711, %v874_v23   ;;  %381 = vperm.xlu1 %709, %v872_v22  }
  0x43   :  { %366 = vperm.xlu2 %710, %v879_v24  }
  0x48   :  { %639 = vmatmul.msk.bf16.gmra.mxu0 %vm233_vm2, %v680_v30 }
  0x4a   :  { %361 = vperm.xlu0 %711, %v888_v29   ;;  %371 = vperm.xlu1 %709, %v881_v25  }
  0x4b   :  { %356 = vperm.xlu2 %710, %v883_v26  }
  0x58   :  { %640 = vmatmul.msk.bf16.gmra.mxu0 %vm233_vm2, %v681_v31 }
  0x6c   :  { %v161_v32 = vpop.permute.xlu2 %160 }
  0x74   :  { %v166_v34 = vpop.permute.xlu2 %165 }
  0x7c   :  { %v141_v36 = vpop.permute.xlu2 %140 }
  0x82   :  { %v181_v33 = vpop.permute.xlu0 %180 }
  0x83   :  { %v171_v57 = vpop.permute.xlu1 %170 }
  0x84   :  { %v136_v41 = vpop.permute.xlu2 %135 }
  0x8b   :  { %v186_v35 = vpop.permute.xlu0 %185  ;;  %v176_v61 = vpop.permute.xlu1 %175 }
  0x8c   :  { %v111_v46 = vpop.permute.xlu2 %110 }
  0x93   :  { %v151_v37 = vpop.permute.xlu0 %150  ;;  %v156_v14 = vpop.permute.xlu1 %155 }
  0x95   :  { %v274_v38 = vpop.f32.mrf.mxu0 }
  0x96   :  { %v275_v47 = vadd.f32 %v274_v38, %v111_v46 }
  0x98   :  { %v314_v52 = vmax.f32 %v275_v47, 0.0  ;;  %v685_v47 = vld [vmem:[%s942_s2] sm:$0xff] }
  0x9b   :  { %v146_v39 = vpop.permute.xlu0 %145  ;;  %v299_v40 = vpop.f32.mrf.mxu3 }
  0x9c   :  { %v300_v5 = vadd.f32 %v299_v40, %v161_v32  ;;  %v131_v19 = vpop.permute.xlu1 %130 }
  0x9d   :  { %v276_v42 = vpop.f32.mrf.mxu0 }
  0x9e   :  { %v324_v10 = vmax.f32 %v300_v5, 0.0 }
  0xa3   :  { %v895_v43 = vpop.permute.xlu0 %120  ;;  %v301_v44 = vpop.f32.mrf.mxu3 }
  0xa4   :  { %v302_v6 = vadd.f32 %v301_v44, %v166_v34  ;;  %v126_v23 = vpop.permute.xlu1 %125 }
  0xa5   :  { %v897_v45 = vpop.f32.mrf.mxu0 }
  0xa6   :  { %v325_v11 = vmax.f32 %v302_v6, 0.0 }
  0xa8   :  { %v335_v15 = vpack.c.bf16 %v325_v11, %v324_v10 }
  0xab   :  { %v116_v48 = vpop.permute.xlu0 %115  ;;  %v304_v49 = vpop.f32.mrf.mxu3 }
  0xac   :  { %v277_v50 = vadd.f32 %v276_v42, %v116_v48  ;;  %v305_v63 = vadd.f32 %v304_v49, %v171_v57  ;;  %v688_v48 = vld [vmem:[%s942_s2 + $0x18] sm:$0xff]  ;;  %v805_v57 = vmov 2  }
  0xad   :  { %v281_v51 = vpop.f32.mrf.mxu0  ;;  %712 = vset.pattern.permute.xlu1 %v805_v57  ;;  %714 = vset.pattern.permute.xlu0 %v805_v57 }
  0xae   :  { %v315_v53 = vmax.f32 %v277_v50, 0.0  ;;  %v326_v7 = vmax.f32 %v305_v63, 0.0  ;;  %v282_v21 = vadd.f32 %v281_v51, %v126_v23  ;;  %479 = vperm.xlu1 %712, %v879_v24   ;;  %469 = vperm.xlu0 %714, %v883_v26  }
  0xaf   :  { %713 = vset.pattern.permute.xlu2 %v805_v57 }
  0xb0   :  { %v899_v54 = vpack.c.bf16 %v315_v53, %v314_v52  ;;  %v317_v44 = vmax.f32 %v282_v21, 0.0  ;;  %484 = vperm.xlu2 %713, %v881_v25  }
  0xb3   :  { %v306_v55 = vpop.f32.mrf.mxu3 }
  0xb4   :  { %v307_v0 = vadd.f32 %v306_v55, %v176_v61 }
  0xb5   :  { %v284_v56 = vpop.f32.mrf.mxu0 }
  0xb6   :  { %v327_v8 = vmax.f32 %v307_v0, 0.0  ;;  %v285_v18 = vadd.f32 %v284_v56, %v131_v19  ;;  %v392_v56 = vpop.permute.xlu2 %391  ;;  %474 = vperm.xlu1 %712, %v888_v29  }
  0xb8   :  { %v336_v12 = vpack.c.bf16 %v327_v8, %v326_v7  ;;  %v318_v42 = vmax.f32 %v285_v18, 0.0 }
  0xbb   :  { %v309_v58 = vpop.f32.mrf.mxu3 }
  0xbc   :  { %v310_v60 = vadd.f32 %v309_v58, %v181_v33 }
  0xbd   :  { %v286_v59 = vpop.f32.mrf.mxu0 }
  0xbe   :  { %v328_v1 = vmax.f32 %v310_v60, 0.0  ;;  %v287_v34 = vadd.f32 %v286_v59, %v136_v41  ;;  %v377_v60 = vpop.permute.xlu0 %376  ;;  %v367_v61 = vpop.permute.xlu2 %366 }
  0xc3   :  { %v311_v62 = vpop.f32.mrf.mxu3 }
  0xc4   :  { %v312_v2 = vadd.f32 %v311_v62, %v186_v35 }
  0xc5   :  { %v289_v3 = vpop.f32.mrf.mxu0 }
  0xc6   :  { %v329_v4 = vmax.f32 %v312_v2, 0.0  ;;  %v290_v31 = vadd.f32 %v289_v3, %v141_v36  ;;  %v280_v36 = vadd.f32 %v897_v45, %v895_v43  ;;  %v686_v43 = vld [vmem:[%s942_s2 + $0x8] sm:$0xff]  ;;  %v687_v45 = vld [vmem:[%s942_s2 + $0x10] sm:$0xff]  ;;  %v362_v8 = vpop.permute.xlu0 %361  ;;  %v357_v25 = vpop.permute.xlu2 %356 }
  0xc8   :  { %v337_v9 = vpack.c.bf16 %v329_v4, %v328_v1  ;;  %v320_v40 = vmax.f32 %v290_v31, 0.0  ;;  %v316_v22 = vmax.f32 %v280_v36, 0.0  ;;  %v806_v31 = vmov 3  }
  0xc9   :  { %716 = vset.pattern.permute.xlu1 %v806_v31  ;;  %715 = vset.pattern.permute.xlu2 %v806_v31 }
  0xca   :  { %418 = vmatpush.bf16.msra.mxu1 %v337_v9  ;;  %v331_v46 = vpack.c.bf16 %v317_v44, %v316_v22  ;;  %540 = vperm.xlu1 %716, %v888_v29   ;;  %v691_v29 = vld [vmem:[%s944_s4] sm:$0xff] }
  0xcb   :  { %535 = vperm.xlu2 %715, %v883_v26  }
  0xcd   :  { %v291_v13 = vpop.f32.mrf.mxu0 }
  0xce   :  { %419 = vmatpush.bf16.msra.mxu1 %v336_v12  ;;  %v292_v28 = vadd.f32 %v291_v13, %v146_v39 }
  0xd0   :  { %v321_v35 = vmax.f32 %v292_v28, 0.0  ;;  %v690_v28 = vld [vmem:[#allocation4 + $0x8] sm:$0xff] }
  0xd2   :  { %420 = vmatpush.bf16.msra.mxu1 %v335_v15  ;;  %v333_v39 = vpack.c.bf16 %v321_v35, %v320_v40 }
  0xd5   :  { %v294_v16 = vpop.f32.mrf.mxu0 }
  0xd6   :  { %v295_v20 = vadd.f32 %v294_v16, %v151_v37  ;;  %v319_v37 = vmax.f32 %v287_v34, 0.0 }
  0xd8   :  { %v322_v32 = vmax.f32 %v295_v20, 0.0  ;;  %v332_v41 = vpack.c.bf16 %v319_v37, %v318_v42 }
  0xdd   :  { %v296_v27 = vpop.f32.mrf.mxu0 }
  0xde   :  { %v297_v30 = vadd.f32 %v296_v27, %v156_v14  ;;  %v689_v27 = vld [vmem:[#allocation4] sm:$0xff] }
  0xe0   :  { %v323_v33 = vmax.f32 %v297_v30, 0.0 }
  0xe2   :  { %v334_v38 = vpack.c.bf16 %v323_v33, %v322_v32 }
  0xe4   :  { %421 = vmatpush.bf16.msra.mxu1 %v334_v38 }
  0xe8   :  { %422 = vmatpush.bf16.msra.mxu1 %v333_v39 }
  0xec   :  { %423 = vmatpush.bf16.msra.mxu1 %v332_v41 }
  0xf0   :  { %424 = vmatpush.bf16.msra.mxu1 %v331_v46 }
  0xf4   :  { %425 = vmatpush.bf16.msra.mxu1 %v899_v54  ;;  %v387_v54 = vpop.permute.xlu1 %386 }
  0xf7   :  { %426 = vmatmul.bf16.vlgmr.msra.gmra.mxu1 %v685_v47  ;;  %v807_v47 = vmov 4  }
  0xf8   :  { %717 = vset.pattern.permute.xlu2 %v807_v47  ;;  %718 = vset.pattern.permute.xlu0 %v807_v47 }
  0xf9   :  { %573 = vperm.xlu2 %717, %v883_v26  }
  0xfc   :  { %v382_v58 = vpop.permute.xlu1 %381 }
 0x104   :  { %v372_v2 = vpop.permute.xlu1 %371 }
 0x107   :  { %431 = vmatmul.bf16.gmra.mxu1 %v686_v43 }
 0x10a   :  { %v485_v38 = vpop.permute.xlu2 %484 }
 0x117   :  { %436 = vmatmul.bf16.gmra.mxu1 %v687_v45 }
 0x120   :  { %v480_v33 = vpop.permute.xlu1 %479  ;;  %v470_v18 = vpop.permute.xlu0 %469 }
 0x125   :  { %v536_v45 = vpop.permute.xlu2 %535 }
 0x127   :  { %441 = vmatmul.bf16.gmra.mxu1 %v688_v48 }
 0x128   :  { %v475_v35 = vpop.permute.xlu1 %474 }
 0x13c   :  { %v541_v48 = vpop.permute.xlu1 %540 }
 0x174   :  { %v427_v49 = vpop.f32.mrf.mxu1 }
 0x175   :  { %v428_v14 = vadd.f32 %v427_v49, %v357_v25 }
 0x177   :  { %v447_v19 = vmax.f32 %v428_v14, 0.0 }
 0x17c   :  { %v429_v50 = vpop.f32.mrf.mxu1 }
 0x17d   :  { %v430_v11 = vadd.f32 %v429_v50, %v362_v8 }
 0x17f   :  { %v448_v16 = vmax.f32 %v430_v11, 0.0 }
 0x181   :  { %v455_v20 = vpack.c.bf16 %v448_v16, %v447_v19 }
 0x184   :  { %v432_v51 = vpop.f32.mrf.mxu1 }
 0x185   :  { %v433_v9 = vadd.f32 %v432_v51, %v367_v61 }
 0x187   :  { %v449_v15 = vmax.f32 %v433_v9, 0.0 }
 0x18c   :  { %v434_v52 = vpop.f32.mrf.mxu1 }
 0x18d   :  { %v435_v6 = vadd.f32 %v434_v52, %v372_v2 }
 0x18f   :  { %v450_v12 = vmax.f32 %v435_v6, 0.0 }
 0x191   :  { %v456_v17 = vpack.c.bf16 %v450_v12, %v449_v15 }
 0x194   :  { %v437_v53 = vpop.f32.mrf.mxu1 }
 0x195   :  { %v438_v3 = vadd.f32 %v437_v53, %v377_v60 }
 0x197   :  { %v451_v10 = vmax.f32 %v438_v3, 0.0 }
 0x19c   :  { %v439_v55 = vpop.f32.mrf.mxu1 }
 0x19d   :  { %v440_v0 = vadd.f32 %v439_v55, %v382_v58  ;;  %v569_v55 = vld [vmem:[%s945_s5] sm:$0xf] }
 0x19f   :  { %v452_v7 = vmax.f32 %v440_v0, 0.0 }
 0x1a1   :  { %v457_v13 = vpack.c.bf16 %v452_v7, %v451_v10 }
 0x1a4   :  { %v442_v59 = vpop.f32.mrf.mxu1 }
 0x1a5   :  { %v443_v62 = vadd.f32 %v442_v59, %v387_v54 }
 0x1a7   :  { %v453_v4 = vmax.f32 %v443_v62, 0.0 }
 0x1ac   :  { %v444_v63 = vpop.f32.mrf.mxu1 }
 0x1ad   :  { %v445_v1 = vadd.f32 %v444_v63, %v392_v56  ;;  %v574_v56 = vpop.permute.xlu2 %573 }
 0x1af   :  { %v454_v5 = vmax.f32 %v445_v1, 0.0 }
 0x1b1   :  { %v458_v24 = vpack.c.bf16 %v454_v5, %v453_v4 }
 0x1b3   :  { %508 = vmatpush.bf16.msra.mxu2 %v458_v24 }
 0x1b7   :  { %509 = vmatpush.bf16.msra.mxu2 %v457_v13 }
 0x1bb   :  { %510 = vmatpush.bf16.msra.mxu2 %v456_v17 }
 0x1bf   :  { %511 = vmatpush.bf16.msra.mxu2 %v455_v20 }
 0x1c2   :  { %668 = vmatmul.msk.bf16.vlgmr.msra.gmra.mxu2 %vm497_vm3, %v689_v27 }
 0x1d2   :  { %669 = vmatmul.msk.bf16.gmra.mxu2 %vm497_vm3, %v690_v28 }
 0x245   :  { %v513_v30 = vpop.f32.mrf.mxu2 }
 0x246   :  { %v514_v39 = vadd.f32 %v513_v30, %v470_v18 }
 0x248   :  { %v523_v22 = vmax.f32 %v514_v39, 0.0 }
 0x24d   :  { %v515_v32 = vpop.f32.mrf.mxu2 }
 0x24e   :  { %v516_v21 = vadd.f32 %v515_v32, %v475_v35 }
 0x250   :  { %v524_v44 = vmax.f32 %v516_v21, 0.0 }
 0x252   :  { %v527_v46 = vpack.c.bf16 %v524_v44, %v523_v22 }
 0x255   :  { %v518_v34 = vpop.f32.mrf.mxu2 }
 0x256   :  { %v519_v23 = vadd.f32 %v518_v34, %v480_v33 }
 0x258   :  { %v525_v36 = vmax.f32 %v519_v23, 0.0 }
 0x25d   :  { %v520_v40 = vpop.f32.mrf.mxu2 }
 0x25e   :  { %v521_v37 = vadd.f32 %v520_v40, %v485_v38 }
 0x260   :  { %v526_v42 = vmax.f32 %v521_v37, 0.0 }
 0x262   :  { %v528_v41 = vpack.c.bf16 %v526_v42, %v525_v36 }
 0x264   :  { %558 = vmatpush.bf16.msrb.mxu3 %v528_v41 }
 0x268   :  { %559 = vmatpush.bf16.msrb.mxu3 %v527_v46 }
 0x26b   :  { %674 = vmatmul.msk.bf16.vlgmr.msrb.gmra.mxu3 %vm548_vm4, %v691_v29 }
 0x2ee   :  { %v561_v43 = vpop.f32.mrf.mxu3 }
 0x2ef   :  { %v562_v49 = vadd.f32 %v561_v43, %v536_v45 }
 0x2f1   :  { %v566_v52 = vmax.f32 %v562_v49, 0.0 }
 0x2f6   :  { %v563_v50 = vpop.f32.mrf.mxu3 }
 0x2f7   :  { %v564_v51 = vadd.f32 %v563_v50, %v541_v48 }
 0x2f9   :  { %v567_v53 = vmax.f32 %v564_v51, 0.0 }
 0x2fb   :  { %v568_v54 = vpack.c.bf16 %v567_v53, %v566_v52 }
 0x2fd   :  { %587 = vmatpush.bf16.msra.mxu3 %v568_v54 }
 0x300   :  { %675 = vmatmul.msk.bf16.vlgmr.msra.gmra.mxu3 %vm576_vm5, %v569_v55 }
 0x383   :  { %v589_v57 = vpop.f32.mrf.mxu3 }
 0x384   :  { %v590_v58 = vadd.f32 %v589_v57, %v574_v56 }
 0x386   :  { %593 = vst [vmem:[%s947_s7] sm:$0xff] %v590_v58 }
 0x38b   :  { %v591_v26 = vpop.f32.mrf.mxu3 }
 0x38c   :  { %598 = vsyncpa [#allocation3], 1 }
 0x38d   :  { %599 = vsyncpa [#allocation5], 1 }

</bundles_post_ra>
